<compile_context>
chip_gen: v6e
topology: v6e:2x2x1
jax: 0.10.0
libtpu: 0.0.40
codegen_flags: <defaults>
</compile_context>

<pallas_src>
import functools

import jax
import jax.numpy as jnp
from jax.experimental import pallas as pl
from jax.experimental.pallas import tpu as pltpu

BN_EPS = 1e-5
LANE = 128


def _round_up(n, m):
    return ((n + m - 1) // m) * m


def _pad2(a, rows, cols):
    r, c = a.shape
    return jnp.pad(a, ((0, rows - r), (0, cols - c)))


def _batchnorm_train(h, gamma, beta):
    # BatchNorm1d in training mode: batch mean, biased batch variance, one pass.
    mean = jnp.mean(h, axis=0, keepdims=True)
    mean_sq = jnp.mean(h * h, axis=0, keepdims=True)
    var = jnp.maximum(mean_sq - mean * mean, 0.0)
    return (h - mean) * jax.lax.rsqrt(var + BN_EPS) * gamma + beta


def vae_kernel(
    x_ref, z_ref,
    w_en_ref, b_en_ref, g_en_ref, be_en_ref,
    w_head_ref, b_head_ref,
    w_de_ref, b_de_ref, g_de_ref, be_de_ref,
    w_fin_ref, b_fin_ref,
    res_ref, mulv_ref,
    *, latent_pad,
):
    x = x_ref[...].astype(jnp.bfloat16)
    z = z_ref[...]  # f32 std-normal noise

    # ---- encoder: Linear -> BatchNorm1d(train) -> Tanh ----
    h = jnp.dot(x, w_en_ref[...], preferred_element_type=jnp.float32) + b_en_ref[...]
    h = jnp.tanh(_batchnorm_train(h, g_en_ref[...], be_en_ref[...]))

    # ---- fused mu / log_var head (single MXU pass, lane-dense result) ----
    head = jnp.dot(h.astype(jnp.bfloat16), w_head_ref[...],
                   preferred_element_type=jnp.float32) + b_head_ref[...]
    mu = head[:, :latent_pad]
    log_var = head[:, latent_pad:]

    # ---- reparameterize (module semantics: eps ~ N(mu, exp(0.5*lv)); out = mu + lv*eps)
    # folded form: norm = mu*(1 + lv) + lv*exp(0.5*lv)*z
    norm = mu * (1.0 + log_var) + log_var * jnp.exp(0.5 * log_var) * z

    # ---- decoder: Linear -> BatchNorm1d(train) -> Tanh ----
    d = jnp.dot(norm.astype(jnp.bfloat16), w_de_ref[...],
                preferred_element_type=jnp.float32) + b_de_ref[...]
    d = jnp.tanh(_batchnorm_train(d, g_de_ref[...], be_de_ref[...]))

    # ---- final linear ----
    res = jnp.dot(d.astype(jnp.bfloat16), w_fin_ref[...],
                  preferred_element_type=jnp.float32) + b_fin_ref[...]

    res_ref[...] = res            # [B, input_pad]    lane-dense store
    mulv_ref[...] = head          # [B, 2*latent_pad] lane-dense store (mu ‖ log_var)


def pack_params(params, input_dim, hidden_dim, latent_dim):
    """Pad to lane multiples, fuse mu/var heads, cast matmul weights to bf16."""
    ip = _round_up(input_dim, LANE)
    hp = _round_up(hidden_dim, LANE)
    lp = _round_up(latent_dim, LANE)

    w_head = jnp.concatenate(
        [_pad2(params["w_mu"], hp, lp), _pad2(params["w_var"], hp, lp)], axis=1)
    b_head = jnp.concatenate(
        [_pad2(params["b_mu"], 1, lp), _pad2(params["b_var"], 1, lp)], axis=1)

    return dict(
        w_en=_pad2(params["w_en"], ip, hp).astype(jnp.bfloat16),
        b_en=_pad2(params["b_en"], 1, hp),
        g_en=_pad2(params["g_en"], 1, hp),
        be_en=_pad2(params["be_en"], 1, hp),
        w_head=w_head.astype(jnp.bfloat16),
        b_head=b_head,
        w_de=_pad2(params["w_de"], lp, hp).astype(jnp.bfloat16),
        b_de=_pad2(params["b_de"], 1, hp),
        g_de=_pad2(params["g_de"], 1, hp),
        be_de=_pad2(params["be_de"], 1, hp),
        w_fin=_pad2(params["w_fin"], hp, ip).astype(jnp.bfloat16),
        b_fin=_pad2(params["b_fin"], 1, ip),
    )


def vae_forward(x, z, params):
    """VAE forward. Returns (res, x, mu, log_var) like the PyTorch module."""
    B, input_dim = x.shape
    latent_dim = z.shape[1]
    hidden_dim = params["w_en"].shape[1]

    ip = _round_up(input_dim, LANE)
    hp = _round_up(hidden_dim, LANE)
    lp = _round_up(latent_dim, LANE)
    del hp  # (hidden padding handled inside pack_params)

    packed = pack_params(params, input_dim, hidden_dim, latent_dim)
    x_p = _pad2(x, B, ip)
    z_p = _pad2(z, B, lp)

    inputs = (
        x_p, z_p,
        packed["w_en"], packed["b_en"], packed["g_en"], packed["be_en"],
        packed["w_head"], packed["b_head"],
        packed["w_de"], packed["b_de"], packed["g_de"], packed["be_de"],
        packed["w_fin"], packed["b_fin"],
    )

    vmem = pl.BlockSpec(memory_space=pltpu.MemorySpace.VMEM)

    # Explicit VMEM budget: all operands + outputs, 2x for buffering, + headroom.
    in_bytes = sum(int(a.size) * a.dtype.itemsize for a in inputs)
    out_bytes = B * ip * 4 + B * 2 * lp * 4
    vmem_limit = min(max(2 * (in_bytes + out_bytes) + (4 << 20), 8 << 20), 64 << 20)

    res_p, mulv_p = pl.pallas_call(
        functools.partial(vae_kernel, latent_pad=lp),
        out_shape=(
            jax.ShapeDtypeStruct((B, ip), jnp.float32),
            jax.ShapeDtypeStruct((B, 2 * lp), jnp.float32),
        ),
        in_specs=[vmem] * len(inputs),
        out_specs=(vmem, vmem),
        compiler_params=pltpu.CompilerParams(vmem_limit_bytes=vmem_limit),
    )(*inputs)

    res = res_p[:, :input_dim]
    mu = mulv_p[:, :latent_dim]
    log_var = mulv_p[:, lp:lp + latent_dim]
    return res, x, mu, log_var


def vae_reference(x, z, params):
    """Pure-JAX reference mirroring the PyTorch module (matmul operands in bf16,
    matching the kernel's MXU precision; everything else f32)."""
    def mm(a, w, b):
        return jnp.dot(a.astype(jnp.bfloat16), w.astype(jnp.bfloat16),
                       preferred_element_type=jnp.float32) + b

    def bn(h, g, b):
        m = jnp.mean(h, axis=0, keepdims=True)
        v = jnp.mean((h - m) ** 2, axis=0, keepdims=True)
        return (h - m) / jnp.sqrt(v + BN_EPS) * g + b

    h = jnp.tanh(bn(mm(x, params["w_en"], params["b_en"]),
                    params["g_en"], params["be_en"]))
    mu = mm(h, params["w_mu"], params["b_mu"])
    log_var = mm(h, params["w_var"], params["b_var"])
    std = jnp.exp(0.5 * log_var)
    epsilon = mu + std * z
    norm = mu + log_var * epsilon
    d = jnp.tanh(bn(mm(norm, params["w_de"], params["b_de"]),
                    params["g_de"], params["be_de"]))
    res = mm(d, params["w_fin"], params["b_fin"])
    return res, x, mu, log_var


def init_params(key, input_dim, hidden_dim, latent_dim):
    ks = jax.random.split(key, 5)

    def lin(k, fan_in, fan_out):
        kw, kb = jax.random.split(k)
        bound = 1.0 / jnp.sqrt(fan_in)
        w = jax.random.uniform(kw, (fan_in, fan_out), jnp.float32, -bound, bound)
        b = jax.random.uniform(kb, (1, fan_out), jnp.float32, -bound, bound)
        return w, b

    w_en, b_en = lin(ks[0], input_dim, hidden_dim)
    w_mu, b_mu = lin(ks[1], hidden_dim, latent_dim)
    w_var, b_var = lin(ks[2], hidden_dim, latent_dim)
    w_de, b_de = lin(ks[3], latent_dim, hidden_dim)
    w_fin, b_fin = lin(ks[4], hidden_dim, input_dim)

    return dict(
        w_en=w_en, b_en=b_en,
        g_en=jnp.ones((1, hidden_dim), jnp.float32),
        be_en=jnp.zeros((1, hidden_dim), jnp.float32),
        w_mu=w_mu, b_mu=b_mu,
        w_var=w_var, b_var=b_var,
        w_de=w_de, b_de=b_de,
        g_de=jnp.ones((1, hidden_dim), jnp.float32),
        be_de=jnp.zeros((1, hidden_dim), jnp.float32),
        w_fin=w_fin, b_fin=b_fin,
    )


if __name__ == "__main__":
    B, INPUT_DIM, HIDDEN_DIM, LATENT_DIM = 8, 16, 32, 2

    key = jax.random.PRNGKey(0)
    k_x, k_z, k_p = jax.random.split(key, 3)

    x = jax.random.normal(k_x, (B, INPUT_DIM), jnp.float32)
    z = jax.random.normal(k_z, (B, LATENT_DIM), jnp.float32)  # std-normal noise
    params = init_params(k_p, INPUT_DIM, HIDDEN_DIM, LATENT_DIM)

    res, x_out, mu, log_var = jax.block_until_ready(jax.jit(vae_forward)(x, z, params))

    assert res.shape == (B, INPUT_DIM)
    assert x_out.shape == (B, INPUT_DIM)
    assert mu.shape == (B, LATENT_DIM)
    assert log_var.shape == (B, LATENT_DIM)

    # Parity check against a pure-JAX reference at matched matmul precision.
    r_res, _, r_mu, r_lv = jax.block_until_ready(jax.jit(vae_reference)(x, z, params))
    for got, want in ((res, r_res), (mu, r_mu), (log_var, r_lv)):
        max_err = float(jnp.max(jnp.abs(got - want)))
        assert max_err < 1e-2, f"mismatch vs reference: max_err={max_err}"

    print("KERNEL_OK")
</pallas_src>

<mosaic_0001>
module attributes {stable_mosaic.version = 11 : i64} {
  func.func @vae_kernel(%arg0: memref<8x128xf32, #tpu.memory_space<vmem>>, %arg1: memref<8x128xf32, #tpu.memory_space<vmem>>, %arg2: memref<128x128xbf16, #tpu.memory_space<vmem>>, %arg3: memref<1x128xf32, #tpu.memory_space<vmem>>, %arg4: memref<1x128xf32, #tpu.memory_space<vmem>>, %arg5: memref<1x128xf32, #tpu.memory_space<vmem>>, %arg6: memref<128x256xbf16, #tpu.memory_space<vmem>>, %arg7: memref<1x256xf32, #tpu.memory_space<vmem>>, %arg8: memref<128x128xbf16, #tpu.memory_space<vmem>>, %arg9: memref<1x128xf32, #tpu.memory_space<vmem>>, %arg10: memref<1x128xf32, #tpu.memory_space<vmem>>, %arg11: memref<1x128xf32, #tpu.memory_space<vmem>>, %arg12: memref<128x128xbf16, #tpu.memory_space<vmem>>, %arg13: memref<1x128xf32, #tpu.memory_space<vmem>>, %arg14: memref<8x128xf32, #tpu.memory_space<vmem>>, %arg15: memref<8x256xf32, #tpu.memory_space<vmem>>) attributes {dimension_semantics = [], scalar_prefetch = 0 : i64, scratch_operands = 0 : i64, tpu.core_type = #tpu.core_type<tc>} {
    %c0 = arith.constant 0 : index
    %c0_0 = arith.constant 0 : index
    %0 = vector.load %arg0[%c0, %c0_0] : memref<8x128xf32, #tpu.memory_space<vmem>>, vector<8x128xf32>
    %1 = arith.truncf %0 : vector<8x128xf32> to vector<8x128xbf16>
    %c0_1 = arith.constant 0 : index
    %c0_2 = arith.constant 0 : index
    %2 = vector.load %arg1[%c0_1, %c0_2] : memref<8x128xf32, #tpu.memory_space<vmem>>, vector<8x128xf32>
    %c0_3 = arith.constant 0 : index
    %c0_4 = arith.constant 0 : index
    %3 = vector.load %arg2[%c0_3, %c0_4] : memref<128x128xbf16, #tpu.memory_space<vmem>>, vector<128x128xbf16>
    %cst = arith.constant dense<0.000000e+00> : vector<8x128xf32>
    %4 = tpu.matmul %1, %3, %cst {dimension_numbers = #tpu.dot_dimension_numbers<[1], [0], [0], [1], [0, 0, 1, 1], [], []>} : vector<8x128xbf16>, vector<128x128xbf16>, vector<8x128xf32> -> vector<8x128xf32>
    %c0_5 = arith.constant 0 : index
    %c0_6 = arith.constant 0 : index
    %5 = vector.load %arg3[%c0_5, %c0_6] : memref<1x128xf32, #tpu.memory_space<vmem>>, vector<1x128xf32>
    %6 = vector.broadcast %5 : vector<1x128xf32> to vector<8x128xf32>
    %7 = arith.addf %4, %6 : vector<8x128xf32>
    %c0_7 = arith.constant 0 : index
    %c0_8 = arith.constant 0 : index
    %8 = vector.load %arg4[%c0_7, %c0_8] : memref<1x128xf32, #tpu.memory_space<vmem>>, vector<1x128xf32>
    %c0_9 = arith.constant 0 : index
    %c0_10 = arith.constant 0 : index
    %9 = vector.load %arg5[%c0_9, %c0_10] : memref<1x128xf32, #tpu.memory_space<vmem>>, vector<1x128xf32>
    %cst_11 = arith.constant dense<0.000000e+00> : vector<128xf32>
    %10 = vector.multi_reduction <add>, %7, %cst_11 [0] : vector<8x128xf32> to vector<128xf32>
    %11 = vector.shape_cast %10 : vector<128xf32> to vector<1x128xf32>
    %cst_12 = arith.constant 8.000000e+00 : f32
    %12 = vector.broadcast %cst_12 : f32 to vector<1x128xf32>
    %13 = arith.divf %11, %12 : vector<1x128xf32>
    %14 = arith.mulf %7, %7 : vector<8x128xf32>
    %cst_13 = arith.constant dense<0.000000e+00> : vector<128xf32>
    %15 = vector.multi_reduction <add>, %14, %cst_13 [0] : vector<8x128xf32> to vector<128xf32>
    %16 = vector.shape_cast %15 : vector<128xf32> to vector<1x128xf32>
    %cst_14 = arith.constant 8.000000e+00 : f32
    %17 = vector.broadcast %cst_14 : f32 to vector<1x128xf32>
    %18 = arith.divf %16, %17 : vector<1x128xf32>
    %19 = arith.mulf %13, %13 : vector<1x128xf32>
    %20 = arith.subf %18, %19 : vector<1x128xf32>
    %cst_15 = arith.constant 0.000000e+00 : f32
    %21 = vector.broadcast %cst_15 : f32 to vector<1x128xf32>
    %22 = arith.maximumf %20, %21 : vector<1x128xf32>
    %23 = vector.broadcast %13 : vector<1x128xf32> to vector<8x128xf32>
    %24 = arith.subf %7, %23 : vector<8x128xf32>
    %cst_16 = arith.constant 9.99999974E-6 : f32
    %25 = vector.broadcast %cst_16 : f32 to vector<1x128xf32>
    %26 = arith.addf %22, %25 : vector<1x128xf32>
    %27 = math.rsqrt %26 : vector<1x128xf32>
    %28 = vector.broadcast %27 : vector<1x128xf32> to vector<8x128xf32>
    %29 = arith.mulf %24, %28 : vector<8x128xf32>
    %30 = vector.broadcast %8 : vector<1x128xf32> to vector<8x128xf32>
    %31 = arith.mulf %29, %30 : vector<8x128xf32>
    %32 = vector.broadcast %9 : vector<1x128xf32> to vector<8x128xf32>
    %33 = arith.addf %31, %32 : vector<8x128xf32>
    %34 = math.tanh %33 : vector<8x128xf32>
    %35 = arith.truncf %34 : vector<8x128xf32> to vector<8x128xbf16>
    %c0_17 = arith.constant 0 : index
    %c0_18 = arith.constant 0 : index
    %36 = vector.load %arg6[%c0_17, %c0_18] : memref<128x256xbf16, #tpu.memory_space<vmem>>, vector<128x256xbf16>
    %cst_19 = arith.constant dense<0.000000e+00> : vector<8x256xf32>
    %37 = tpu.matmul %35, %36, %cst_19 {dimension_numbers = #tpu.dot_dimension_numbers<[1], [0], [0], [1], [0, 0, 1, 1], [], []>} : vector<8x128xbf16>, vector<128x256xbf16>, vector<8x256xf32> -> vector<8x256xf32>
    %c0_20 = arith.constant 0 : index
    %c0_21 = arith.constant 0 : index
    %38 = vector.load %arg7[%c0_20, %c0_21] : memref<1x256xf32, #tpu.memory_space<vmem>>, vector<1x256xf32>
    %39 = vector.broadcast %38 : vector<1x256xf32> to vector<8x256xf32>
    %40 = arith.addf %37, %39 : vector<8x256xf32>
    %41 = vector.extract_strided_slice %40 {offsets = [0, 0], sizes = [8, 128], strides = [1, 1]} : vector<8x256xf32> to vector<8x128xf32>
    %42 = vector.extract_strided_slice %40 {offsets = [0, 128], sizes = [8, 128], strides = [1, 1]} : vector<8x256xf32> to vector<8x128xf32>
    %cst_22 = arith.constant 1.000000e+00 : f32
    %43 = vector.broadcast %cst_22 : f32 to vector<8x128xf32>
    %44 = arith.addf %43, %42 : vector<8x128xf32>
    %45 = arith.mulf %41, %44 : vector<8x128xf32>
    %cst_23 = arith.constant 5.000000e-01 : f32
    %46 = vector.broadcast %cst_23 : f32 to vector<8x128xf32>
    %47 = arith.mulf %46, %42 : vector<8x128xf32>
    %48 = math.exp %47 : vector<8x128xf32>
    %49 = arith.mulf %42, %48 : vector<8x128xf32>
    %50 = arith.mulf %49, %2 : vector<8x128xf32>
    %51 = arith.addf %45, %50 : vector<8x128xf32>
    %52 = arith.truncf %51 : vector<8x128xf32> to vector<8x128xbf16>
    %c0_24 = arith.constant 0 : index
    %c0_25 = arith.constant 0 : index
    %53 = vector.load %arg8[%c0_24, %c0_25] : memref<128x128xbf16, #tpu.memory_space<vmem>>, vector<128x128xbf16>
    %cst_26 = arith.constant dense<0.000000e+00> : vector<8x128xf32>
    %54 = tpu.matmul %52, %53, %cst_26 {dimension_numbers = #tpu.dot_dimension_numbers<[1], [0], [0], [1], [0, 0, 1, 1], [], []>} : vector<8x128xbf16>, vector<128x128xbf16>, vector<8x128xf32> -> vector<8x128xf32>
    %c0_27 = arith.constant 0 : index
    %c0_28 = arith.constant 0 : index
    %55 = vector.load %arg9[%c0_27, %c0_28] : memref<1x128xf32, #tpu.memory_space<vmem>>, vector<1x128xf32>
    %56 = vector.broadcast %55 : vector<1x128xf32> to vector<8x128xf32>
    %57 = arith.addf %54, %56 : vector<8x128xf32>
    %c0_29 = arith.constant 0 : index
    %c0_30 = arith.constant 0 : index
    %58 = vector.load %arg10[%c0_29, %c0_30] : memref<1x128xf32, #tpu.memory_space<vmem>>, vector<1x128xf32>
    %c0_31 = arith.constant 0 : index
    %c0_32 = arith.constant 0 : index
    %59 = vector.load %arg11[%c0_31, %c0_32] : memref<1x128xf32, #tpu.memory_space<vmem>>, vector<1x128xf32>
    %cst_33 = arith.constant dense<0.000000e+00> : vector<128xf32>
    %60 = vector.multi_reduction <add>, %57, %cst_33 [0] : vector<8x128xf32> to vector<128xf32>
    %61 = vector.shape_cast %60 : vector<128xf32> to vector<1x128xf32>
    %cst_34 = arith.constant 8.000000e+00 : f32
    %62 = vector.broadcast %cst_34 : f32 to vector<1x128xf32>
    %63 = arith.divf %61, %62 : vector<1x128xf32>
    %64 = arith.mulf %57, %57 : vector<8x128xf32>
    %cst_35 = arith.constant dense<0.000000e+00> : vector<128xf32>
    %65 = vector.multi_reduction <add>, %64, %cst_35 [0] : vector<8x128xf32> to vector<128xf32>
    %66 = vector.shape_cast %65 : vector<128xf32> to vector<1x128xf32>
    %cst_36 = arith.constant 8.000000e+00 : f32
    %67 = vector.broadcast %cst_36 : f32 to vector<1x128xf32>
    %68 = arith.divf %66, %67 : vector<1x128xf32>
    %69 = arith.mulf %63, %63 : vector<1x128xf32>
    %70 = arith.subf %68, %69 : vector<1x128xf32>
    %cst_37 = arith.constant 0.000000e+00 : f32
    %71 = vector.broadcast %cst_37 : f32 to vector<1x128xf32>
    %72 = arith.maximumf %70, %71 : vector<1x128xf32>
    %73 = vector.broadcast %63 : vector<1x128xf32> to vector<8x128xf32>
    %74 = arith.subf %57, %73 : vector<8x128xf32>
    %cst_38 = arith.constant 9.99999974E-6 : f32
    %75 = vector.broadcast %cst_38 : f32 to vector<1x128xf32>
    %76 = arith.addf %72, %75 : vector<1x128xf32>
    %77 = math.rsqrt %76 : vector<1x128xf32>
    %78 = vector.broadcast %77 : vector<1x128xf32> to vector<8x128xf32>
    %79 = arith.mulf %74, %78 : vector<8x128xf32>
    %80 = vector.broadcast %58 : vector<1x128xf32> to vector<8x128xf32>
    %81 = arith.mulf %79, %80 : vector<8x128xf32>
    %82 = vector.broadcast %59 : vector<1x128xf32> to vector<8x128xf32>
    %83 = arith.addf %81, %82 : vector<8x128xf32>
    %84 = math.tanh %83 : vector<8x128xf32>
    %85 = arith.truncf %84 : vector<8x128xf32> to vector<8x128xbf16>
    %c0_39 = arith.constant 0 : index
    %c0_40 = arith.constant 0 : index
    %86 = vector.load %arg12[%c0_39, %c0_40] : memref<128x128xbf16, #tpu.memory_space<vmem>>, vector<128x128xbf16>
    %cst_41 = arith.constant dense<0.000000e+00> : vector<8x128xf32>
    %87 = tpu.matmul %85, %86, %cst_41 {dimension_numbers = #tpu.dot_dimension_numbers<[1], [0], [0], [1], [0, 0, 1, 1], [], []>} : vector<8x128xbf16>, vector<128x128xbf16>, vector<8x128xf32> -> vector<8x128xf32>
    %c0_42 = arith.constant 0 : index
    %c0_43 = arith.constant 0 : index
    %88 = vector.load %arg13[%c0_42, %c0_43] : memref<1x128xf32, #tpu.memory_space<vmem>>, vector<1x128xf32>
    %89 = vector.broadcast %88 : vector<1x128xf32> to vector<8x128xf32>
    %90 = arith.addf %87, %89 : vector<8x128xf32>
    %c0_44 = arith.constant 0 : index
    %c0_45 = arith.constant 0 : index
    %91 = vector.load %arg14[%c0_44, %c0_45] : memref<8x128xf32, #tpu.memory_space<vmem>>, vector<8x128xf32>
    tpu.vector_store %arg14[%c0_44, %c0_45], %90 {strides = array<i32>} : memref<8x128xf32, #tpu.memory_space<vmem>>, vector<8x128xf32>,
    %c0_46 = arith.constant 0 : index
    %c0_47 = arith.constant 0 : index
    %92 = vector.load %arg15[%c0_46, %c0_47] : memref<8x256xf32, #tpu.memory_space<vmem>>, vector<8x256xf32>
    tpu.vector_store %arg15[%c0_46, %c0_47], %40 {strides = array<i32>} : memref<8x256xf32, #tpu.memory_space<vmem>>, vector<8x256xf32>,
    return
  }
}

</mosaic_0001>

<bundles_post_ra>
// kernel: vae_forward.1
= control target key start
LH: loop header
LB: loop body
LE: loop exit
PB: predicated region body
PF: predicated region fallthrough
CT: control target
= control target key end

     0   :  { %v865_v1 = vmov 0.0   ;;  %vm866_vm0 = vmmov 0   ;;  %s1138_s0 = inlined_call_operand.vmem [shape: f32[8,128], index: 0, kind: input, shape index: {}]   ;;  %s1139_s1 = inlined_call_operand.vmem [shape: f32[8,128], index: 1, kind: input, shape index: {}]   ;;  %s1140_s2 = inlined_call_operand.vmem [shape: bf16[128,128], index: 2, kind: input, shape index: {}]   ;;  %s1141_s3 = inlined_call_operand.vmem [shape: f32[1,128], index: 3, kind: input, shape index: {}]   ;;  %s1142_s4 = inlined_call_operand.vmem [shape: f32[1,128], index: 4, kind: input, shape index: {}]   ;;  %s1143_s5 = inlined_call_operand.vmem [shape: f32[1,128], index: 5, kind: input, shape index: {}]   ;;  %s1144_s6 = inlined_call_operand.vmem [shape: bf16[128,256], index: 6, kind: input, shape index: {}]   ;;  %s1145_s7 = inlined_call_operand.vmem [shape: f32[1,256], index: 7, kind: input, shape index: {}]   ;;  %s1146_s8 = inlined_call_operand.vmem [shape: bf16[128,128], index: 8, kind: input, shape index: {}]   ;;  %s1147_s9 = inlined_call_operand.vmem [shape: f32[1,128], index: 9, kind: input, shape index: {}]   ;;  %s1148_s10 = inlined_call_operand.vmem [shape: f32[1,128], index: 10, kind: input, shape index: {}]   ;;  %s1149_s11 = inlined_call_operand.vmem [shape: f32[1,128], index: 11, kind: input, shape index: {}]   ;;  %s1150_s12 = inlined_call_operand.vmem [shape: bf16[128,128], index: 12, kind: input, shape index: {}]   ;;  %s1151_s13 = inlined_call_operand.vmem [shape: f32[1,128], index: 13, kind: input, shape index: {}]   ;;  %s1152_s14 = inlined_call_operand.hbm [shape: f32[8,128], index: 14, kind: output, shape index: {0}]   ;;  %s1153_s15 = inlined_call_operand.vmem [shape: f32[8,256], index: 15, kind: output, shape index: {1}]  }
   0x1   :  { %v785_v0 = vld [vmem:[%s1140_s2 + $0x38] sm:$0xff]   ;;  %721 = vmatprep.subr.bf16.mxu0 %v865_v1  ;;  %v786_v2 = vld [vmem:[%s1140_s2 + $0x30] sm:$0xff]   ;;  %737 = vmatprep.mubr.msk.bf16.mxu0 %vm866_vm0, %v865_v1  ;;  %v787_v3 = vld [vmem:[%s1140_s2 + $0x28] sm:$0xff]  }
   0x2   :  { %722 = vmatpush3.bf16.msra.mxu0 %v785_v0  ;;  %v788_v4 = vld [vmem:[%s1140_s2 + $0x20] sm:$0xff]   ;;  %v789_v5 = vld [vmem:[%s1140_s2 + $0x18] sm:$0xff]   ;;  %v790_v6 = vld [vmem:[%s1140_s2 + $0x10] sm:$0xff]  }
   0x3   :  { %723 = vmatprep.subr.bf16.mxu0 %v865_v1  ;;  %v791_v7 = vld [vmem:[%s1140_s2 + $0x8] sm:$0xff]  }
   0x6   :  { %724 = vmatpush3.bf16.msra.mxu0 %v786_v2 }
   0x7   :  { %725 = vmatprep.subr.bf16.mxu0 %v865_v1 }
   0xa   :  { %726 = vmatpush3.bf16.msra.mxu0 %v787_v3 }
   0xb   :  { %727 = vmatprep.subr.bf16.mxu0 %v865_v1 }
   0xe   :  { %728 = vmatpush3.bf16.msra.mxu0 %v788_v4 }
   0xf   :  { %729 = vmatprep.subr.bf16.mxu0 %v865_v1 }
  0x12   :  { %730 = vmatpush3.bf16.msra.mxu0 %v789_v5 }
  0x13   :  { %731 = vmatprep.subr.bf16.mxu0 %v865_v1 }
  0x16   :  { %732 = vmatpush3.bf16.msra.mxu0 %v790_v6 }
  0x17   :  { %733 = vmatprep.subr.bf16.mxu0 %v865_v1 }
  0x18   :  { %21 = vsyncpa [#allocation3], 0  ;;  %v792_v8 = vld [vmem:[%s1140_s2] sm:$0xff]   ;;  %v793_v11 = vld [vmem:[%s1144_s6 + $0x74] ss:$8 sps:$4 sm:$0xff]   ;;  %v867_v22 = vmov 0  }
  0x19   :  { %v51_v9 = vld [vmem:[%s1138_s0] sm:$0xff]  ;;  %v795_v12 = vld [vmem:[%s1144_s6 + $0x70] ss:$8 sps:$4 sm:$0xff]   ;;  %314 = vmatprep.subr.bf16.mxu1 %v793_v11  ;;  %v799_v15 = vld [vmem:[%s1144_s6 + $0x54] ss:$8 sps:$4 sm:$0xff]   ;;  %346 = vmatprep.mubr.bf16.mxu1 %v867_v22  ;;  %s868_s22 = smov [#allocation2]  }
  0x1a   :  { %734 = vmatpush3.bf16.msra.mxu0 %v791_v7  ;;  %v52_v10 = vpack.c.bf16 %v51_v9, %v51_v9  ;;  %315 = vmatpush1.bf16.msra.mxu1 %v795_v12  ;;  %v796_v13 = vld [vmem:[%s1144_s6 + $0x64] ss:$8 sps:$4 sm:$0xff]   ;;  %v798_v14 = vld [vmem:[%s1144_s6 + $0x60] ss:$8 sps:$4 sm:$0xff]   ;;  %v801_v16 = vld [vmem:[%s1144_s6 + $0x50] ss:$8 sps:$4 sm:$0xff]   ;;  %v224_v7 = vlaneseq }
  0x1b   :  { %735 = vmatprep.subr.bf16.mxu0 %v865_v1  ;;  %316 = vmatprep.subr.bf16.mxu1 %v796_v13  ;;  %v802_v17 = vld [vmem:[%s1144_s6 + $0x44] ss:$8 sps:$4 sm:$0xff]   ;;  %v804_v18 = vld [vmem:[%s1144_s6 + $0x40] ss:$8 sps:$4 sm:$0xff]   ;;  %v805_v19 = vld [vmem:[%s1144_s6 + $0x34] ss:$8 sps:$4 sm:$0xff]  }
  0x1c   :  { %v807_v20 = vld [vmem:[%s1144_s6 + $0x30] ss:$8 sps:$4 sm:$0xff]   ;;  %v808_v21 = vld [vmem:[%s1144_s6 + $0x24] ss:$8 sps:$4 sm:$0xff]   ;;  %v810_v23 = vld [vmem:[%s1144_s6 + $0x20] ss:$8 sps:$4 sm:$0xff]  }
  0x1d   :  { %v811_v24 = vld [vmem:[%s1144_s6 + $0x14] ss:$8 sps:$4 sm:$0xff]   ;;  %v813_v25 = vld [vmem:[%s1144_s6 + $0x10] ss:$8 sps:$4 sm:$0xff]   ;;  %v814_v26 = vld [vmem:[%s1144_s6 + $0x4] ss:$8 sps:$4 sm:$0xff]  }
  0x1e   :  { %736 = vmatpush3.bf16.msra.mxu0 %v792_v8  ;;  %317 = vmatpush1.bf16.msra.mxu1 %v798_v14  ;;  %v816_v27 = vld [vmem:[%s1144_s6] ss:$8 sps:$4 sm:$0xff]   ;;  %v817_v62 = vld [vmem:[%s1146_s8 + $0x38] sm:$0xff]   ;;  %v818_v63 = vld [vmem:[%s1146_s8 + $0x30] sm:$0xff]   ;;  %v225_v8 = vshrl.u32 %v224_v7, 7 }
  0x1f   :  { %741 = vmatprep.subr.bf16.mxu0 %v865_v1  ;;  %318 = vmatprep.subr.bf16.mxu1 %v799_v15  ;;  %v647_v28 = vld [vmem:[%s1141_s3] ss:$0 sm:$0xff]  ;;  %v819_v0 = vld [vmem:[%s1146_s8 + $0x28] sm:$0xff]   ;;  %v821_v3 = vld [vmem:[%s1146_s8 + $0x18] sm:$0xff]  }
  0x20   :  { %v656_v55 = vld [vmem:[%s1142_s4] ss:$0 sm:$0xff]  ;;  %v822_v4 = vld [vmem:[%s1146_s8 + $0x10] sm:$0xff]   ;;  %v823_v5 = vld [vmem:[%s1146_s8 + $0x8] sm:$0xff]   ;;  %v226_v9 = vsub.s32 0, %v225_v8  ;;  %v230_v11 = vsub.s32 1, %v225_v8 }
  0x21   :  { %738 = vmatmul.mubr.bf16.vlgmr.msra.gmra.mxu0 %v52_v10  ;;  %v657_v57 = vld [vmem:[%s1143_s5] ss:$0 sm:$0xff] }
  0x22   :  { %757 = vmatprep.mubr.msk.bf16.mxu0 %vm866_vm0, %v865_v1  ;;  %319 = vmatpush1.bf16.msra.mxu1 %v801_v16  ;;  %v820_v2 = vld [vmem:[%s1146_s8 + $0x20] sm:$0xff]  }
  0x23   :  { %320 = vmatprep.subr.bf16.mxu1 %v802_v17  ;;  %742 = vmatpush3.bf16.msra.mxu0 %v817_v62  ;;  %v824_v6 = vld [vmem:[%s1146_s8] sm:$0xff]  }
  0x24   :  { %743 = vmatprep.subr.bf16.mxu0 %v865_v1  ;;  %v222_v10 = vld [vmem:[%s1145_s7] sm:$0x3]  ;;  %s635_s7 = sshll.u32 %s868_s22, 4  ;;  %s636_s7 = int_to_ptr.vmem [resolvable:$true] %s635_s7 }
  0x25   :  { %v227_v12 = vrot.slane %v222_v10, %v226_v9  ;;  %v231_v13 = vrot.slane %v222_v10, %v230_v11  ;;  %v685_v8 = vld [vmem:[%s1151_s13] ss:$0 sm:$0xff]  ;;  %p848_p1 = scmp.lt.s32.totalorder %s636_s7, %s636_s7 }
  0x26   :  { %321 = vmatpush1.bf16.msra.mxu1 %v804_v18 }
  0x27   :  { %322 = vmatprep.subr.bf16.mxu1 %v805_v19  ;;  %744 = vmatpush3.bf16.msra.mxu0 %v818_v63 }
  0x28   :  { %745 = vmatprep.subr.bf16.mxu0 %v865_v1 }
  0x2a   :  { %323 = vmatpush1.bf16.msra.mxu1 %v807_v20 }
  0x2b   :  { %324 = vmatprep.subr.bf16.mxu1 %v808_v21  ;;  %746 = vmatpush3.bf16.msra.mxu0 %v819_v0  ;;  %v683_v0 = vld [vmem:[%s1148_s10] ss:$0 sm:$0xff]  ;;  %s843_s10 = scalar_lea.vmem %s636_s7, 128 }
  0x2c   :  { %747 = vmatprep.subr.bf16.mxu0 %v865_v1  ;;  %p844_p0 = scmp.ne.s32.totalorder %s636_s7, %s843_s10  ;;  %p849_p2 = scmp.lt.s32.totalorder %s843_s10, %s843_s10 }
  0x2e   :  { %325 = vmatpush1.bf16.msra.mxu1 %v810_v23  ;;  %p850_p3 = por %p849_p2, %p848_p1 }
  0x2f   :  { %326 = vmatprep.subr.bf16.mxu1 %v811_v24  ;;  %748 = vmatpush3.bf16.msra.mxu0 %v820_v2  ;;  %v53_v24 = vld [vmem:[%s1139_s1] sm:$0xff] }
  0x30   :  { %749 = vmatprep.subr.bf16.mxu0 %v865_v1  ;;  %p851_p4 = pnand %p850_p3, %p844_p0 }
  0x32   :  { %327 = vmatpush1.bf16.msra.mxu1 %v813_v25 }
  0x33   :  { %328 = vmatprep.subr.bf16.mxu1 %v814_v26  ;;  %750 = vmatpush3.bf16.msra.mxu0 %v821_v3  ;;  %v684_v3 = vld [vmem:[%s1149_s11] ss:$0 sm:$0xff] }
  0x34   :  { %751 = vmatprep.subr.bf16.mxu0 %v865_v1 }
  0x36   :  { %329 = vmatpush1.bf16.msra.mxu1 %v816_v27 }
  0x37   :  { %761 = vmatprep.subr.bf16.mxu1 %v865_v1  ;;  %752 = vmatpush3.bf16.msra.mxu0 %v822_v4 }
  0x38   :  { %753 = vmatprep.subr.bf16.mxu0 %v865_v1 }
  0x3b   :  { %754 = vmatpush3.bf16.msra.mxu0 %v823_v5 }
  0x3c   :  { %755 = vmatprep.subr.bf16.mxu0 %v865_v1 }
  0x3f   :  { %756 = vmatpush3.bf16.msra.mxu0 %v824_v6 }
  0xe1   :  { %v159_v29 = vpop.f32.mrf.mxu0 }
  0xe2   :  { %v160_v30 = vadd.f32 %v647_v28, %v159_v29 }
  0xe3   :  { %v739_v31 = vpop.f32.mrf.mxu0 }
  0xe4   :  { %v167_v32 = vrot.slane %v160_v30, 4  ;;  %v175_v33 = vmul.f32 %v160_v30, %v160_v30  ;;  %v826_v31 = vld [vmem:[%s1150_s12 + $0x30] sm:$0xff]  }
  0xe5   :  { %v162_v34 = vpop.f32.mrf.mxu0 }
  0xe6   :  { %v168_v35 = vadd.f32 %v167_v32, %v160_v30  ;;  %v176_v36 = vrot.slane %v175_v33, 4  ;;  %v827_v32 = vld [vmem:[%s1150_s12 + $0x28] sm:$0xff]   ;;  %v829_v34 = vld [vmem:[%s1150_s12 + $0x18] sm:$0xff]  }
  0xe7   :  { %v740_v37 = vpop.f32.mrf.mxu0 }
  0xe8   :  { %v169_v38 = vrot.slane %v168_v35, 2  ;;  %v177_v39 = vadd.f32 %v176_v36, %v175_v33  ;;  %v828_v33 = vld [vmem:[%s1150_s12 + $0x20] sm:$0xff]   ;;  %v831_v36 = vld [vmem:[%s1150_s12 + $0x8] sm:$0xff]  }
  0xe9   :  { %v832_v37 = vld [vmem:[%s1150_s12] sm:$0xff]  }
  0xea   :  { %v170_v40 = vadd.f32 %v169_v38, %v168_v35  ;;  %v178_v41 = vrot.slane %v177_v39, 2  ;;  %v830_v35 = vld [vmem:[%s1150_s12 + $0x10] sm:$0xff]   ;;  %v674_v38 = vld [vmem:[%s1147_s9] ss:$0 sm:$0xff] }
  0xec   :  { %v171_v42 = vrot.slane %v170_v40, 1  ;;  %v179_v43 = vadd.f32 %v178_v41, %v177_v39 }
  0xee   :  { %v172_v44 = vadd.f32 %v171_v42, %v170_v40  ;;  %v180_v45 = vrot.slane %v179_v43, 1 }
  0xf0   :  { %v174_v46 = vmul.f32 0.125, %v172_v44  ;;  %v181_v47 = vadd.f32 %v180_v45, %v179_v43 }
  0xf2   :  { %v182_v48 = vmul.f32 0.125, %v181_v47  ;;  %v183_v49 = vmul.f32 %v174_v46, %v174_v46  ;;  %v186_v53 = vsub.f32 %v160_v30, %v174_v46  ;;  %v825_v30 = vld [vmem:[%s1150_s12 + $0x38] sm:$0xff]  }
  0xf4   :  { %v184_v50 = vsub.f32 %v182_v48, %v183_v49 }
  0xf6   :  { %v185_v51 = vmax.f32 %v184_v50, 0.0 }
  0xf8   :  { %v187_v52 = vadd.f32 1e-05, %v185_v51 }
  0xfa   :  { %833 = vrsqrt.f32 %v187_v52 }
 0x107   :  { %v834_v54 = vpop.eup %833 }
 0x108   :  { %v189_v56 = vmul.f32 %v834_v54, %v186_v53 }
 0x10a   :  { %v196_v58 = vmul.f32 %v656_v55, %v189_v56 }
 0x10c   :  { %v203_v59 = vadd.f32 %v657_v57, %v196_v58 }
 0x10e   :  { %835 = vtanh.f32 %v203_v59 }
 0x11b   :  { %v836_v60 = vpop.eup %835 }
 0x11c   :  { %v205_v61 = vpack.c.bf16 %v836_v60, %v836_v60 }
 0x11e   :  { %347 = vmatmul.mubr.bf16.vlgmr.msra.gmra.mxu1 %v205_v61 }
 0x11f   :  { %777 = vmatprep.mubr.msk.bf16.mxu1 %vm866_vm0, %v865_v1  ;;  %762 = vmatpush3.bf16.msra.mxu1 %v825_v30 }
 0x120   :  { %763 = vmatprep.subr.bf16.mxu1 %v865_v1 }
 0x123   :  { %764 = vmatpush3.bf16.msra.mxu1 %v826_v31 }
 0x124   :  { %765 = vmatprep.subr.bf16.mxu1 %v865_v1 }
 0x127   :  { %766 = vmatpush3.bf16.msra.mxu1 %v827_v32 }
 0x128   :  { %767 = vmatprep.subr.bf16.mxu1 %v865_v1 }
 0x12b   :  { %768 = vmatpush3.bf16.msra.mxu1 %v828_v33 }
 0x12c   :  { %769 = vmatprep.subr.bf16.mxu1 %v865_v1 }
 0x12f   :  { %770 = vmatpush3.bf16.msra.mxu1 %v829_v34 }
 0x130   :  { %771 = vmatprep.subr.bf16.mxu1 %v865_v1 }
 0x133   :  { %772 = vmatpush3.bf16.msra.mxu1 %v830_v35 }
 0x134   :  { %773 = vmatprep.subr.bf16.mxu1 %v865_v1 }
 0x137   :  { %774 = vmatpush3.bf16.msra.mxu1 %v831_v36 }
 0x138   :  { %775 = vmatprep.subr.bf16.mxu1 %v865_v1 }
 0x13b   :  { %776 = vmatpush3.bf16.msra.mxu1 %v832_v37 }
 0x1de   :  { %v348_v14 = vpop.f32.mrf.mxu1 }
 0x1df   :  { %v349_v15 = vadd.f32 %v348_v14, %v227_v12 }
 0x1e0   :  { %v350_v16 = vpop.f32.mrf.mxu1 }
 0x1e1   :  { %627 = vst [vmem:[%s1153_s15] sm:$0xff] %v349_v15  ;;  %v351_v17 = vadd.f32 %v350_v16, %v231_v13 }
 0x1e2   :  { %v352_v18 = vpop.f32.mrf.mxu1 }
 0x1e3   :  { %v357_v19 = vmul.f32 0.5, %v351_v17  ;;  %628 = vst [vmem:[%s1153_s15 + $0x8] sm:$0xff] %v351_v17  ;;  %v355_v22 = vadd.f32 1.0, %v351_v17 }
 0x1e4   :  { %v353_v20 = vpop.f32.mrf.mxu1 }
 0x1e5   :  { %v358_v21 = vmul.f32 1.442695, %v357_v19  ;;  %v356_v26 = vmul.f32 %v355_v22, %v349_v15 }
 0x1e7   :  { %837 = vpow2.f32 %v358_v21 }
 0x1f4   :  { %v838_v23 = vpop.eup %837 }
 0x1f5   :  { %v360_v25 = vmul.f32 %v838_v23, %v351_v17 }
 0x1f7   :  { %v361_v27 = vmul.f32 %v360_v25, %v53_v24 }
 0x1f9   :  { %v362_v28 = vadd.f32 %v361_v27, %v356_v26 }
 0x1fb   :  { %v363_v29 = vpack.c.bf16 %v362_v28, %v362_v28 }
 0x1fd   :  { %758 = vmatmul.mubr.bf16.vlgmr.msra.gmra.mxu0 %v363_v29 }
 0x2bd   :  { %v469_v39 = vpop.f32.mrf.mxu0 }
 0x2be   :  { %v470_v40 = vadd.f32 %v674_v38, %v469_v39 }
 0x2bf   :  { %v759_v41 = vpop.f32.mrf.mxu0 }
 0x2c0   :  { %v477_v42 = vrot.slane %v470_v40, 4  ;;  %v484_v43 = vmul.f32 %v470_v40, %v470_v40 }
 0x2c1   :  { %v472_v44 = vpop.f32.mrf.mxu0 }
 0x2c2   :  { %v478_v45 = vadd.f32 %v477_v42, %v470_v40  ;;  %v485_v46 = vrot.slane %v484_v43, 4 }
 0x2c3   :  { %v760_v47 = vpop.f32.mrf.mxu0 }
 0x2c4   :  { %v479_v48 = vrot.slane %v478_v45, 2  ;;  %v486_v49 = vadd.f32 %v485_v46, %v484_v43 }
 0x2c6   :  { %v480_v50 = vadd.f32 %v479_v48, %v478_v45  ;;  %v487_v51 = vrot.slane %v486_v49, 2 }
 0x2c8   :  { %v481_v52 = vrot.slane %v480_v50, 1  ;;  %v488_v1 = vadd.f32 %v487_v51, %v486_v49 }
 0x2ca   :  { %v482_v53 = vadd.f32 %v481_v52, %v480_v50  ;;  %v489_v54 = vrot.slane %v488_v1, 1 }
 0x2cc   :  { %v483_v55 = vmul.f32 0.125, %v482_v53  ;;  %v490_v56 = vadd.f32 %v489_v54, %v488_v1 }
 0x2ce   :  { %v491_v57 = vmul.f32 0.125, %v490_v56  ;;  %v492_v58 = vmul.f32 %v483_v55, %v483_v55  ;;  %v495_v62 = vsub.f32 %v470_v40, %v483_v55 }
 0x2d0   :  { %v493_v59 = vsub.f32 %v491_v57, %v492_v58 }
 0x2d2   :  { %v494_v60 = vmax.f32 %v493_v59, 0.0 }
 0x2d4   :  { %v496_v61 = vadd.f32 1e-05, %v494_v60 }
 0x2d6   :  { %839 = vrsqrt.f32 %v496_v61 }
 0x2e3   :  { %v840_v63 = vpop.eup %839 }
 0x2e4   :  { %v498_v2 = vmul.f32 %v840_v63, %v495_v62 }
 0x2e6   :  { %v505_v4 = vmul.f32 %v683_v0, %v498_v2 }
 0x2e8   :  { %v512_v5 = vadd.f32 %v684_v3, %v505_v4 }
 0x2ea   :  { %841 = vtanh.f32 %v512_v5 }
 0x2f7   :  { %v842_v6 = vpop.eup %841 }
 0x2f8   :  { %v514_v7 = vpack.c.bf16 %v842_v6, %v842_v6 }
 0x2fa   :  { %778 = vmatmul.mubr.bf16.vlgmr.msra.gmra.mxu1 %v514_v7 }
 0x3ba   :  { %v620_v9 = vpop.f32.mrf.mxu1 }
 0x3bb   :  { %v621_v10 = vadd.f32 %v685_v8, %v620_v9 }
 0x3bc   :  { %v779_v11 = vpop.f32.mrf.mxu1 }
 0x3bd   :  { %626 = vst [vmem:[#allocation2] sm:$0xff] %v621_v10 }
 0x3be   :  { %v623_v12 = vpop.f32.mrf.mxu1 }
 0x3bf   :  { %854 = shalt.err (!%p851_p4)
}
 0x3c0   :  { %638 = dma.vmem_to_hbm [thread:$0]  %s636_s7, 128, %s1152_s14, [#allocation3]   ;;  %v780_v13 = vpop.f32.mrf.mxu1 }
 0x3c1   :  { %863 = dma.done.wait [#allocation3], 128  }
 0x3c2   :  { %864 = vsyncadd [#allocation3], 4294967168 }
 0x3c3   :  { %646 = vsyncpa [#allocation3], 1 }

</bundles_post_ra>
